<compile_context>
chip_gen: v7x
topology: tpu7x:2x2x1
jax: 0.10.0
libtpu: 0.0.40
codegen_flags: <defaults>
</compile_context>

<pallas_src>
import jax
import jax.numpy as jnp
from jax.experimental import pallas as pl
from jax.experimental.pallas import tpu as pltpu


_BLOCK_BYTES_CAP = 4 * 1024 * 1024     # per-step input block (v7x-safe w/ 2x buffering)
_VMEM_LIMIT_BYTES = 32 * 1024 * 1024   # scoped VMEM request (safe on v5e/v6e/v7x)


def _pick_divisor(total, unit, cap):
    """Largest divisor of `total` that is a multiple of `unit` (or == total)
    and <= cap; falls back to the smallest valid divisor if none fit."""
    divs = []
    i = 1
    while i * i <= total:
        if total % i == 0:
            divs.append(i)
            if i != total // i:
                divs.append(total // i)
        i += 1
    valid = [d for d in divs if (d % unit == 0) or (d == total)]
    under = [d for d in valid if d <= cap]
    return max(under) if under else min(valid)


def _losses_from_stats(mean, var, inv_c):
    """Per-channel stats (any 2-D shape) -> two (1, 1) scalar losses.

    Mirrors the PyTorch math exactly:
      std = sqrt(abs(var + 1e-10))
      loss1 = mean(clamp(min(2-mean-std, 2+mean-std), 0)^2) + mean(clamp(std-4, 0)^2)
      loss2 = mean(clamp(mean^2 - std^2, 0))
    """
    var = var + 1e-10
    std = jnp.sqrt(jnp.abs(var))
    ta = jnp.maximum(jnp.minimum(2.0 - mean - std, 2.0 + mean - std), 0.0)
    tb = jnp.maximum(std - 4.0, 0.0)
    tc = jnp.maximum(mean * mean - std * std, 0.0)
    loss1 = (jnp.sum(ta * ta, keepdims=True) + jnp.sum(tb * tb, keepdims=True)) * inv_c
    loss2 = jnp.sum(tc, keepdims=True) * inv_c
    return loss1, loss2


def _make_channel_stats_kernel(c, per_channel_count, lane_accum):
    """Kernel for 4-D input, grid = (N, K_chunks).

    lane_accum=True : x block is [1, C, k_chunk, 128]; accumulate [C, 128]
                      per-lane partial sums (VPU/sublane adds per step, one
                      cross-lane reduce in finalize).
    lane_accum=False: x block is [1, C, M]; reduce lanes each step into [C, 1].
    """
    inv_total = 1.0 / float(per_channel_count)
    inv_c = 1.0 / float(c)

    def kernel(x_ref, loss1_ref, loss2_ref, sum_acc, sq_acc):
        n = pl.program_id(0)
        m = pl.program_id(1)

        @pl.when((n == 0) & (m == 0))
        def _init():
            sum_acc[...] = jnp.zeros_like(sum_acc)
            sq_acc[...] = jnp.zeros_like(sq_acc)

        x = x_ref[0].astype(jnp.float32)
        if lane_accum:
            # x: [C, k_chunk, 128] -> partial sums per lane slot: [C, 128]
            sum_acc[...] += jnp.sum(x, axis=1)
            sq_acc[...] += jnp.sum(x * x, axis=1)
        else:
            # x: [C, M_block] -> per-channel scalar partials: [C, 1]
            sum_acc[...] += jnp.sum(x, axis=-1, keepdims=True)
            sq_acc[...] += jnp.sum(x * x, axis=-1, keepdims=True)

        @pl.when((n == pl.num_programs(0) - 1) & (m == pl.num_programs(1) - 1))
        def _finalize():
            if lane_accum:
                s = jnp.sum(sum_acc[...], axis=-1, keepdims=True)   # [C, 1]
                q = jnp.sum(sq_acc[...], axis=-1, keepdims=True)    # [C, 1]
            else:
                s = sum_acc[...]
                q = sq_acc[...]
            mean = s * inv_total
            var = q * inv_total - mean * mean   # one-pass; f32 accumulators
            l1, l2 = _losses_from_stats(mean, var, inv_c)
            loss1_ref[...] = l1
            loss2_ref[...] = l2

    return kernel


def _make_batch_stats_kernel(c, n_total):
    """Kernel for 2-D [N, C] input, grid = (N_chunks,). Channels live on lanes."""
    inv_total = 1.0 / float(n_total)
    inv_c = 1.0 / float(c)

    def kernel(x_ref, loss1_ref, loss2_ref, sum_acc, sq_acc):
        i = pl.program_id(0)

        @pl.when(i == 0)
        def _init():
            sum_acc[...] = jnp.zeros_like(sum_acc)
            sq_acc[...] = jnp.zeros_like(sq_acc)

        x = x_ref[...].astype(jnp.float32)                      # [n_chunk, C]
        sum_acc[...] += jnp.sum(x, axis=0, keepdims=True)       # [1, C]
        sq_acc[...] += jnp.sum(x * x, axis=0, keepdims=True)    # [1, C]

        @pl.when(i == pl.num_programs(0) - 1)
        def _finalize():
            mean = sum_acc[...] * inv_total                     # [1, C]
            var = sq_acc[...] * inv_total - mean * mean
            l1, l2 = _losses_from_stats(mean, var, inv_c)
            loss1_ref[...] = l1
            loss2_ref[...] = l2

    return kernel


def _scalar_out_specs(grid_rank):
    if grid_rank == 2:
        idx = lambda i, j: (0, 0)
    else:
        idx = lambda i: (0, 0)
    return (pl.BlockSpec((1, 1), idx), pl.BlockSpec((1, 1), idx))


def _distrloss_4d(x):
    n, c, h, w = x.shape
    hw = h * w
    itemsize = x.dtype.itemsize

    if hw % 128 == 0:
        # Free reshape: fold spatial into (sublane, lane) = (K, 128) so each
        # channel occupies dense vregs even when C is small.
        k = hw // 128
        cap = max(1, _BLOCK_BYTES_CAP // (c * 128 * itemsize))
        k_chunk = _pick_divisor(k, 8, cap)
        x_r = x.reshape(n, c, k, 128)
        grid = (n, k // k_chunk)
        in_spec = pl.BlockSpec((1, c, k_chunk, 128), lambda i, j: (i, 0, j, 0))
        acc_shape = (c, 128)
        lane_accum = True
    else:
        # Fallback for odd spatial sizes: full [C, H*W] slab per batch element.
        x_r = x.reshape(n, c, hw)
        grid = (n, 1)
        in_spec = pl.BlockSpec((1, c, hw), lambda i, j: (i, 0, 0))
        acc_shape = (c, 1)
        lane_accum = False

    kernel = _make_channel_stats_kernel(c, n * hw, lane_accum)
    loss1, loss2 = pl.pallas_call(
        kernel,
        out_shape=(jax.ShapeDtypeStruct((1, 1), jnp.float32),
                   jax.ShapeDtypeStruct((1, 1), jnp.float32)),
        grid=grid,
        in_specs=[in_spec],
        out_specs=_scalar_out_specs(2),
        scratch_shapes=[pltpu.VMEM(acc_shape, jnp.float32),
                        pltpu.VMEM(acc_shape, jnp.float32)],
        compiler_params=pltpu.CompilerParams(
            dimension_semantics=("arbitrary", "arbitrary"),
            vmem_limit_bytes=_VMEM_LIMIT_BYTES),
        cost_estimate=pl.CostEstimate(
            flops=3 * int(x.size),
            transcendentals=0,
            bytes_accessed=int(x.size) * itemsize),
    )(x_r)
    return loss1[0, 0], loss2[0, 0]


def _distrloss_2d(x):
    n, c = x.shape
    itemsize = x.dtype.itemsize
    cap = max(1, _BLOCK_BYTES_CAP // max(1, c * itemsize))
    n_chunk = _pick_divisor(n, 8, cap)
    grid = (n // n_chunk,)

    kernel = _make_batch_stats_kernel(c, n)
    loss1, loss2 = pl.pallas_call(
        kernel,
        out_shape=(jax.ShapeDtypeStruct((1, 1), jnp.float32),
                   jax.ShapeDtypeStruct((1, 1), jnp.float32)),
        grid=grid,
        in_specs=[pl.BlockSpec((n_chunk, c), lambda i: (i, 0))],
        out_specs=_scalar_out_specs(1),
        scratch_shapes=[pltpu.VMEM((1, c), jnp.float32),
                        pltpu.VMEM((1, c), jnp.float32)],
        compiler_params=pltpu.CompilerParams(
            dimension_semantics=("arbitrary",),
            vmem_limit_bytes=_VMEM_LIMIT_BYTES),
        cost_estimate=pl.CostEstimate(
            flops=3 * int(x.size),
            transcendentals=0,
            bytes_accessed=int(x.size) * itemsize),
    )(x)
    return loss1[0, 0], loss2[0, 0]


def distrloss_layer(x, channels):
    """JAX/Pallas equivalent of Distrloss_layer(channels).forward(x)."""
    if x.ndim != 4 and x.ndim != 2:
        raise ValueError(
            "expected 4D or 2D input (got {}D input)".format(x.ndim))
    if x.shape[1] != channels:
        raise ValueError(
            "expected {} channels (got {} channels)".format(channels, x.shape[1]))
    if x.ndim == 4:
        return _distrloss_4d(x)
    return _distrloss_2d(x)


def _reference(x):
    """Pure-JAX reference mirroring the PyTorch code (for a silent check)."""
    x = x.astype(jnp.float32)
    if x.ndim == 4:
        mean = x.mean(axis=-1).mean(axis=-1).mean(axis=0)
        var = ((x - mean[None, :, None, None]) ** 2).mean(axis=-1).mean(axis=-1).mean(axis=0)
    else:
        mean = x.mean(axis=0)
        var = ((x - mean[None, :]) ** 2).mean(axis=0)
    var = var + 1e-10
    std = jnp.sqrt(jnp.abs(var))
    l1 = (jnp.maximum(jnp.minimum(2 - mean - std, 2 + mean - std), 0.0) ** 2).mean() \
        + (jnp.maximum(std - 4.0, 0.0) ** 2).mean()
    l2 = jnp.maximum(mean ** 2 - std ** 2, 0.0).mean()
    return l1, l2


if __name__ == "__main__":
    # 4-D NCHW path (matches the module's primary use).
    key = jax.random.PRNGKey(0)
    x = jax.random.normal(key, (2, 4, 16, 16), dtype=jnp.float32)
    l1, l2 = distrloss_layer(x, channels=4)
    jax.block_until_ready((l1, l2))
    r1, r2 = _reference(x)
    assert jnp.allclose(l1, r1, atol=1e-5, rtol=1e-5), (l1, r1)
    assert jnp.allclose(l2, r2, atol=1e-5, rtol=1e-5), (l2, r2)

    # 2-D [N, C] path.
    x2 = jax.random.normal(jax.random.PRNGKey(1), (16, 4), dtype=jnp.float32)
    l1b, l2b = distrloss_layer(x2, channels=4)
    jax.block_until_ready((l1b, l2b))
    r1b, r2b = _reference(x2)
    assert jnp.allclose(l1b, r1b, atol=1e-5, rtol=1e-5), (l1b, r1b)
    assert jnp.allclose(l2b, r2b, atol=1e-5, rtol=1e-5), (l2b, r2b)

    print("KERNEL_OK")
</pallas_src>

<mosaic_0001>
module attributes {stable_mosaic.version = 11 : i64} {
  func.func @kernel(%arg0: i32, %arg1: i32, %arg2: memref<1x4x2x128xf32, #tpu.memory_space<vmem>>, %arg3: memref<1x1xf32, #tpu.memory_space<vmem>>, %arg4: memref<1x1xf32, #tpu.memory_space<vmem>>, %arg5: memref<4x128xf32, #tpu.memory_space<vmem>>, %arg6: memref<4x128xf32, #tpu.memory_space<vmem>>) attributes {dimension_semantics = [#tpu.dimension_semantics<arbitrary>, #tpu.dimension_semantics<arbitrary>], iteration_bounds = array<i64: 2, 1>, scalar_prefetch = 0 : i64, scratch_operands = 2 : i64, tpu.core_type = #tpu.core_type<tc>, window_params = [{transform_indices = @transform_0, window_bounds = array<i64: 1, 4, 2, 128>}, {pipeline_mode = #tpu.pipeline_mode<synchronous>, transform_indices = @transform_1, window_bounds = array<i64: 1, 1>}, {pipeline_mode = #tpu.pipeline_mode<synchronous>, transform_indices = @transform_2, window_bounds = array<i64: 1, 1>}]} {
    %c0_i32 = arith.constant 0 : i32
    %0 = arith.cmpi eq, %arg0, %c0_i32 : i32
    %c0_i32_0 = arith.constant 0 : i32
    %1 = arith.cmpi eq, %arg1, %c0_i32_0 : i32
    %2 = arith.andi %0, %1 : i1
    %3 = arith.extui %2 : i1 to i32
    %c0_i32_1 = arith.constant 0 : i32
    %4 = arith.cmpi ne, %3, %c0_i32_1 : i32
    scf.if %4 {
      %cst_16 = arith.constant 0.000000e+00 : f32
      %21 = vector.broadcast %cst_16 : f32 to vector<4x128xf32>
      %c0_17 = arith.constant 0 : index
      %c0_18 = arith.constant 0 : index
      %22 = vector.load %arg5[%c0_17, %c0_18] : memref<4x128xf32, #tpu.memory_space<vmem>>, vector<4x128xf32>
      tpu.vector_store %arg5[%c0_17, %c0_18], %21 {strides = array<i32>} : memref<4x128xf32, #tpu.memory_space<vmem>>, vector<4x128xf32>,
      %cst_19 = arith.constant 0.000000e+00 : f32
      %23 = vector.broadcast %cst_19 : f32 to vector<4x128xf32>
      %c0_20 = arith.constant 0 : index
      %c0_21 = arith.constant 0 : index
      %24 = vector.load %arg6[%c0_20, %c0_21] : memref<4x128xf32, #tpu.memory_space<vmem>>, vector<4x128xf32>
      tpu.vector_store %arg6[%c0_20, %c0_21], %23 {strides = array<i32>} : memref<4x128xf32, #tpu.memory_space<vmem>>, vector<4x128xf32>,
    } else {
    }
    %c0 = arith.constant 0 : index
    %c0_2 = arith.constant 0 : index
    %c0_3 = arith.constant 0 : index
    %c0_4 = arith.constant 0 : index
    %5 = vector.load %arg2[%c0, %c0_2, %c0_3, %c0_4] : memref<1x4x2x128xf32, #tpu.memory_space<vmem>>, vector<1x4x2x128xf32>
    %6 = vector.shape_cast %5 : vector<1x4x2x128xf32> to vector<4x2x128xf32>
    %c0_5 = arith.constant 0 : index
    %c0_6 = arith.constant 0 : index
    %7 = vector.load %arg5[%c0_5, %c0_6] : memref<4x128xf32, #tpu.memory_space<vmem>>, vector<4x128xf32>
    %cst = arith.constant dense<0.000000e+00> : vector<4x128xf32>
    %8 = vector.multi_reduction <add>, %6, %cst [1] : vector<4x2x128xf32> to vector<4x128xf32>
    %9 = arith.addf %7, %8 : vector<4x128xf32>
    %c0_7 = arith.constant 0 : index
    %c0_8 = arith.constant 0 : index
    %10 = vector.load %arg5[%c0_7, %c0_8] : memref<4x128xf32, #tpu.memory_space<vmem>>, vector<4x128xf32>
    tpu.vector_store %arg5[%c0_7, %c0_8], %9 {strides = array<i32>} : memref<4x128xf32, #tpu.memory_space<vmem>>, vector<4x128xf32>,
    %c0_9 = arith.constant 0 : index
    %c0_10 = arith.constant 0 : index
    %11 = vector.load %arg6[%c0_9, %c0_10] : memref<4x128xf32, #tpu.memory_space<vmem>>, vector<4x128xf32>
    %12 = arith.mulf %6, %6 : vector<4x2x128xf32>
    %cst_11 = arith.constant dense<0.000000e+00> : vector<4x128xf32>
    %13 = vector.multi_reduction <add>, %12, %cst_11 [1] : vector<4x2x128xf32> to vector<4x128xf32>
    %14 = arith.addf %11, %13 : vector<4x128xf32>
    %c0_12 = arith.constant 0 : index
    %c0_13 = arith.constant 0 : index
    %15 = vector.load %arg6[%c0_12, %c0_13] : memref<4x128xf32, #tpu.memory_space<vmem>>, vector<4x128xf32>
    tpu.vector_store %arg6[%c0_12, %c0_13], %14 {strides = array<i32>} : memref<4x128xf32, #tpu.memory_space<vmem>>, vector<4x128xf32>,
    %c1_i32 = arith.constant 1 : i32
    %16 = arith.cmpi eq, %arg0, %c1_i32 : i32
    %c0_i32_14 = arith.constant 0 : i32
    %17 = arith.cmpi eq, %arg1, %c0_i32_14 : i32
    %18 = arith.andi %16, %17 : i1
    %19 = arith.extui %18 : i1 to i32
    %c0_i32_15 = arith.constant 0 : i32
    %20 = arith.cmpi ne, %19, %c0_i32_15 : i32
    scf.if %20 {
      %c0_16 = arith.constant 0 : index
      %c0_17 = arith.constant 0 : index
      %21 = vector.load %arg5[%c0_16, %c0_17] : memref<4x128xf32, #tpu.memory_space<vmem>>, vector<4x128xf32>
      %cst_18 = arith.constant dense<0.000000e+00> : vector<4xf32>
      %22 = vector.multi_reduction <add>, %21, %cst_18 [1] : vector<4x128xf32> to vector<4xf32>
      %23 = vector.shape_cast %22 : vector<4xf32> to vector<4x1xf32>
      %c0_19 = arith.constant 0 : index
      %c0_20 = arith.constant 0 : index
      %24 = vector.load %arg6[%c0_19, %c0_20] : memref<4x128xf32, #tpu.memory_space<vmem>>, vector<4x128xf32>
      %cst_21 = arith.constant dense<0.000000e+00> : vector<4xf32>
      %25 = vector.multi_reduction <add>, %24, %cst_21 [1] : vector<4x128xf32> to vector<4xf32>
      %26 = vector.shape_cast %25 : vector<4xf32> to vector<4x1xf32>
      %cst_22 = arith.constant 0.001953125 : f32
      %27 = vector.broadcast %cst_22 : f32 to vector<4x1xf32>
      %28 = arith.mulf %23, %27 : vector<4x1xf32>
      %cst_23 = arith.constant 0.001953125 : f32
      %29 = vector.broadcast %cst_23 : f32 to vector<4x1xf32>
      %30 = arith.mulf %26, %29 : vector<4x1xf32>
      %31 = arith.mulf %28, %28 : vector<4x1xf32>
      %32 = arith.subf %30, %31 : vector<4x1xf32>
      %cst_24 = arith.constant 1.000000e-10 : f32
      %33 = vector.broadcast %cst_24 : f32 to vector<4x1xf32>
      %34 = arith.addf %32, %33 : vector<4x1xf32>
      %35 = math.absf %34 : vector<4x1xf32>
      %36 = math.sqrt %35 : vector<4x1xf32>
      %cst_25 = arith.constant 2.000000e+00 : f32
      %37 = vector.broadcast %cst_25 : f32 to vector<4x1xf32>
      %38 = arith.subf %37, %28 : vector<4x1xf32>
      %39 = arith.subf %38, %36 : vector<4x1xf32>
      %cst_26 = arith.constant 2.000000e+00 : f32
      %40 = vector.broadcast %cst_26 : f32 to vector<4x1xf32>
      %41 = arith.addf %40, %28 : vector<4x1xf32>
      %42 = arith.subf %41, %36 : vector<4x1xf32>
      %43 = arith.minimumf %39, %42 : vector<4x1xf32>
      %cst_27 = arith.constant 0.000000e+00 : f32
      %44 = vector.broadcast %cst_27 : f32 to vector<4x1xf32>
      %45 = arith.maximumf %43, %44 : vector<4x1xf32>
      %cst_28 = arith.constant 4.000000e+00 : f32
      %46 = vector.broadcast %cst_28 : f32 to vector<4x1xf32>
      %47 = arith.subf %36, %46 : vector<4x1xf32>
      %cst_29 = arith.constant 0.000000e+00 : f32
      %48 = vector.broadcast %cst_29 : f32 to vector<4x1xf32>
      %49 = arith.maximumf %47, %48 : vector<4x1xf32>
      %50 = arith.mulf %28, %28 : vector<4x1xf32>
      %51 = arith.mulf %36, %36 : vector<4x1xf32>
      %52 = arith.subf %50, %51 : vector<4x1xf32>
      %cst_30 = arith.constant 0.000000e+00 : f32
      %53 = vector.broadcast %cst_30 : f32 to vector<4x1xf32>
      %54 = arith.maximumf %52, %53 : vector<4x1xf32>
      %55 = arith.mulf %45, %45 : vector<4x1xf32>
      %56 = vector.shape_cast %55 : vector<4x1xf32> to vector<1x4x1xf32>
      %cst_31 = arith.constant dense<0.000000e+00> : vector<1xf32>
      %57 = vector.multi_reduction <add>, %56, %cst_31 [1, 2] : vector<1x4x1xf32> to vector<1xf32>
      %58 = vector.shape_cast %57 : vector<1xf32> to vector<1x1x1xf32>
      %59 = vector.extract %58[0, 0, 0] : f32 from vector<1x1x1xf32>
      %60 = vector.broadcast %59 : f32 to vector<1x1xf32>
      %61 = arith.mulf %49, %49 : vector<4x1xf32>
      %62 = vector.shape_cast %61 : vector<4x1xf32> to vector<1x4x1xf32>
      %cst_32 = arith.constant dense<0.000000e+00> : vector<1xf32>
      %63 = vector.multi_reduction <add>, %62, %cst_32 [1, 2] : vector<1x4x1xf32> to vector<1xf32>
      %64 = vector.shape_cast %63 : vector<1xf32> to vector<1x1x1xf32>
      %65 = vector.extract %64[0, 0, 0] : f32 from vector<1x1x1xf32>
      %66 = vector.broadcast %65 : f32 to vector<1x1xf32>
      %67 = arith.addf %60, %66 : vector<1x1xf32>
      %cst_33 = arith.constant 2.500000e-01 : f32
      %68 = vector.broadcast %cst_33 : f32 to vector<1x1xf32>
      %69 = arith.mulf %67, %68 : vector<1x1xf32>
      %70 = vector.shape_cast %54 : vector<4x1xf32> to vector<1x4x1xf32>
      %cst_34 = arith.constant dense<0.000000e+00> : vector<1xf32>
      %71 = vector.multi_reduction <add>, %70, %cst_34 [1, 2] : vector<1x4x1xf32> to vector<1xf32>
      %72 = vector.shape_cast %71 : vector<1xf32> to vector<1x1x1xf32>
      %73 = vector.extract %72[0, 0, 0] : f32 from vector<1x1x1xf32>
      %74 = vector.broadcast %73 : f32 to vector<1x1xf32>
      %cst_35 = arith.constant 2.500000e-01 : f32
      %75 = vector.broadcast %cst_35 : f32 to vector<1x1xf32>
      %76 = arith.mulf %74, %75 : vector<1x1xf32>
      %c0_36 = arith.constant 0 : index
      %c0_37 = arith.constant 0 : index
      %77 = vector.load %arg3[%c0_36, %c0_37] : memref<1x1xf32, #tpu.memory_space<vmem>>, vector<1x1xf32>
      tpu.vector_store %arg3[%c0_36, %c0_37], %69 {strides = array<i32>} : memref<1x1xf32, #tpu.memory_space<vmem>>, vector<1x1xf32>,
      %c0_38 = arith.constant 0 : index
      %c0_39 = arith.constant 0 : index
      %78 = vector.load %arg4[%c0_38, %c0_39] : memref<1x1xf32, #tpu.memory_space<vmem>>, vector<1x1xf32>
      tpu.vector_store %arg4[%c0_38, %c0_39], %76 {strides = array<i32>} : memref<1x1xf32, #tpu.memory_space<vmem>>, vector<1x1xf32>,
    } else {
    }
    return
  }
  func.func @transform_0(%arg0: i32, %arg1: i32) -> (i32, i32, i32, i32) {
    %c0_i32 = arith.constant 0 : i32
    %c0_i32_0 = arith.constant 0 : i32
    %c0_i32_1 = arith.constant 0 : i32
    return %arg0, %c0_i32, %arg1, %c0_i32_0 : i32, i32, i32, i32
  }
  func.func @transform_1(%arg0: i32, %arg1: i32) -> (i32, i32) {
    %c0_i32 = arith.constant 0 : i32
    %c0_i32_0 = arith.constant 0 : i32
    %c0_i32_1 = arith.constant 0 : i32
    return %c0_i32, %c0_i32_0 : i32, i32
  }
  func.func @transform_2(%arg0: i32, %arg1: i32) -> (i32, i32) {
    %c0_i32 = arith.constant 0 : i32
    %c0_i32_0 = arith.constant 0 : i32
    %c0_i32_1 = arith.constant 0 : i32
    return %c0_i32, %c0_i32_0 : i32, i32
  }
}

</mosaic_0001>

<bundles_post_ra>
// kernel: tpu_custom_call.1
= control target key start
LH: loop header
LB: loop body
LE: loop exit
PB: predicated region body
PF: predicated region fallthrough
CT: control target
= control target key end

     0   :  { %8 = vsyncpa [#allocation5], 0  ;;  %s892_s0 = inlined_call_operand.hbm [shape: f32[2,4,2,128], index: 0, kind: input, shape index: {}]   ;;  %s893_s1 = inlined_call_operand.hbm [shape: f32[1,1], index: 1, kind: output, shape index: {0}]   ;;  %s894_s2 = inlined_call_operand.hbm [shape: f32[1,1], index: 2, kind: output, shape index: {1}]  }
   0x1   :  { %10 = vsyncpa [#allocation5 + $0x1], 0 }
   0x2   :  { %11 = vsyncpa [#allocation6], 0 }
   0x3   :  { %12 = vsyncpa [#allocation9], 0  ;;  %s695_s9 = smov 0   ;;  %s697_s10 = smov 0  }
   0x4   :  { %s699_s11 = smov 0   ;;  %s701_s12 = smov 0  }
   0x5   :  { %s703_s13 = smov 0   ;;  %s705_s14 = smov 0  }
   0x6 LB: > { %s432_s15 = sadd.s32 4294967295, %s672_s14   ;;  %s30_s16 = sadd.s32 1, %s668_s13  ;;  %s672_s14 = sphi %s705_s14, %s18_s14   ;;  %s668_s13 = sphi %s703_s13, %s903_s13   ;;  %s664_s12 = sphi %s701_s12, %s902_s12   ;;  %s660_s11 = sphi %s699_s11, %s901_s11   ;;  %s656_s10 = sphi %s697_s10, %s900_s10   ;;  %s652_s9 = sphi %s695_s9, %s899_s9  }
   0x7   : > { %p32_p0 = scmp.ge.s32.totalorder %s30_s16, 2  ;;  %s39_s17 = sadd.s32 1, %s660_s11 }
   0x8   : > { %p46_p1 = scmp.ne.s32.totalorder %s660_s11, %s656_s10  ;;  %p47_p2 = scmp.eq.s32.totalorder %s672_s14, 0 }
   0x9   : > { %s905_s16 = smov (%p32_p0, %s30_s16), 0  ;;  %p52_p4 = scmp.ne.s32.totalorder %s656_s10, %s652_s9 }
   0xa   : > { %p731_p3 = por %p47_p2, %p46_p1  ;;  %s34_s19 = ssub.s32 %s668_s13, %s905_s16 }
   0xb   : > { %p53_p5 = scmp.eq.s32.totalorder %s432_s15, 0  ;;  %p37_p6 = scmp.eq.s32.totalorder %s34_s19, 0 }
   0xc   : > { %p472_p8 = scmp.lt.s32.totalorder %s672_s14, 2  ;;  %s118_s22 = sand.u32 1, %s660_s11  }
   0xd   : > { %p740_p7 = por %p53_p5, %p52_p4  ;;  %s449_s23 = sshll.u32 %s668_s13, 7 }
   0xe   : > { %s746_s21 = scalar_select %p37_p6, %s660_s11, %s39_s17  }
   0xf   : > { %s435_s24 = sshll.u32 %s118_s22, 3  ;;  %s753_s27 = scalar_lea.hbm %s892_s0, %s449_s23 }
  0x10   : > { %s122_s28 = scalar_lea.vmem [#allocation4], %s435_s24  ;;  %p757_p9 = pnand %p472_p8, %p731_p3 }
  0x11   : > { %s130_s29 = sshll.u32 %s122_s28, 4  ;;  %s763_s3 = scalar_lea.sflag [#allocation5], %s118_s22  ;;  %s761_s29 = int_to_ptr.vmem [resolvable:$true] %s130_s29 }
  0x12   : > { %s532_s4 = scalar_lea.hbm %s753_s27, 128  ;;  %p534_p11 = pneg %p757_p9 }
  0x13   : > { %p533_p10 = scmp.ne.s32.totalorder %s753_s27, %s532_s4  ;;  %s537_s7 = scalar_lea.hbm %s892_s0, 256 }
  0x14   : > { %p538_p0 = scmp.lt.u32.totalorder %s753_s27, %s892_s0  ;;  %p539_p1 = scmp.lt.u32.totalorder %s537_s7, %s532_s4 }
  0x15   : > { %p535_p12 = pnand %p534_p11, %p533_p10  ;;  %p541_p3 = scmp.lt.u32.totalorder %s532_s4, %s753_s27 }
  0x16   : > { %p540_p2 = por %p539_p1, %p538_p0 }
  0x17   : > { %p536_p13 = pneg %p535_p12 }
  0x18   : > { %p542_p4 = por %p541_p3, %p540_p2 }
  0x1a   : > { %p543_p5 = pnand %p542_p4, %p536_p13 }
  0x1c   : > { %546 = shalt.err (!%p543_p5)
}
  0x1d   : > { %s547_s17 = scalar_lea.vmem %s761_s29, 128  ;;  %s674_s18 = smov [#allocation4]  }
  0x1e   : > { %p548_p6 = scmp.ne.s32.totalorder %s761_s29, %s547_s17  ;;  %s552_s19 = sshll.u32 %s674_s18, 4  ;;  %s553_s19 = int_to_ptr.vmem [resolvable:$false] %s552_s19 }
  0x1f   : > { %s554_s22 = scalar_lea.vmem %s553_s19, 256  ;;  %p555_p12 = scmp.lt.s32.totalorder %s761_s29, %s553_s19 }
  0x20   : > { %p550_p8 = pnand %p548_p6, %p534_p11  ;;  %p556_p0 = scmp.lt.s32.totalorder %s554_s22, %s547_s17 }
  0x22   : > { %p551_p10 = pneg %p550_p8  ;;  %p557_p1 = por %p556_p0, %p555_p12 }
  0x24   : > { %p558_p2 = pnand %p557_p1, %p551_p10 }
  0x26   : > { %561 = shalt.err (!%p558_p2)
}
  0x27   : > { %s675_s23 = smov 32   ;;  %s676_s24 = smov 2  }
  0x28   : > { %471 = dma.hbm_to_vmem [thread:$0]  (!%p757_p9), %s753_s27, 128, %s761_s29, %s763_s3, %s675_s23, %s675_s23, %s676_s24  }
  0x29   : > { %p438_p11 = scmp.ge.s32.totalorder %s672_s14, 1  ;;  %p138_p13 = scmp.lt.s32.totalorder %s672_s14, 3 }
  0x2b   : > { %p139_p3 = pnand %p438_p11, %p138_p13 }
  0x2c   : > { %s144_s25 = sand.u32 (!%p139_p3), 1, %s656_s10  }
  0x2d   : > { %142 = sbr.rel (%p139_p3) target bundleno = 532 (0x214), region = 24  ;;  %s439_s26 = sshll.u32 (!%p139_p3), %s144_s25, 3 }
  0x2e   : > { %s145_s28 = scalar_lea.sflag (!%p139_p3), [#allocation5], %s144_s25  ;;  %s148_s4 = scalar_lea.vmem (!%p139_p3), [#allocation4], %s439_s26 }
  0x34   : > { %639 = dma.done.wait (%p740_p7), %s145_s28, 128  }
  0x35   : > { %641 = vsyncadd (%p740_p7), %s145_s28, 4294967168  ;;  %p164_p4 = scmp.eq.s32.totalorder %s664_s12, 0 }
  0x36   : > { %v677_v0 = vmov (%p164_p4), 0.0  }
  0x37   : > { %169 = sbr.rel (!%p164_p4) target bundleno = 62 (0x3e), region = 32  ;;  %170 = vst [vmem:[#allocation2] sm:$0xf] (%p164_p4), %v677_v0  ;;  %171 = vst [vmem:[#allocation3] sm:$0xf] (%p164_p4), %v677_v0 }
  0x3e PF: > { %v172_v1 = vld [vmem:[%s148_s4] sm:$0x3]  ;;  %v173_v2 = vld [vmem:[%s148_s4 + $0x2] sm:$0x3]  ;;  %v174_v3 = vld [vmem:[%s148_s4 + $0x4] sm:$0x3] }
  0x3f   : > { %v175_v4 = vld [vmem:[%s148_s4 + $0x6] sm:$0x3]  ;;  %vm177_vm0 = vcmask 1041408   ;;  %v220_v5 = vmul.f32 %v172_v1, %v172_v1  ;;  %v221_v6 = vmul.f32 %v173_v2, %v173_v2  ;;  %p262_p7 = scmp.eq.s32.totalorder %s664_s12, 1  ;;  %vm210_vm1 = vcmask 1041409  }
  0x40   : > { %v178_v7 = vsel %vm177_vm0, %v172_v1, 0.0  ;;  %v185_v8 = vsel %vm177_vm0, %v173_v2, 0.0  ;;  %v192_v9 = vsel %vm177_vm0, %v174_v3, 0.0  ;;  %v199_v10 = vsel %vm177_vm0, %v175_v4, 0.0  ;;  %v176_v57 = vld [vmem:[#allocation2] sm:$0xf] }
  0x41   : > { %v179_v11 = vrot.slane %v178_v7, 4  ;;  %v186_v12 = vrot.slane %v185_v8, 4  ;;  %v193_v13 = vrot.slane %v192_v9, 4  ;;  %v200_v14 = vrot.slane %v199_v10, 4 }
  0x42   : > { %v222_v15 = vmul.f32 %v174_v3, %v174_v3  ;;  %v223_v16 = vmul.f32 %v175_v4, %v175_v4  ;;  %vm212_vm2 = vcmask 1042434   ;;  %vm214_vm3 = vcmask 1043459  }
  0x43   : > { %v180_v17 = vadd.f32 %v179_v11, %v178_v7  ;;  %v187_v18 = vadd.f32 %v186_v12, %v185_v8  ;;  %v194_v19 = vadd.f32 %v193_v13, %v192_v9  ;;  %v201_v20 = vadd.f32 %v200_v14, %v199_v10 }
  0x44   : > { %v224_v21 = vsel %vm177_vm0, %v220_v5, 0.0  ;;  %v231_v22 = vsel %vm177_vm0, %v221_v6, 0.0  ;;  %v238_v23 = vsel %vm177_vm0, %v222_v15, 0.0  ;;  %v245_v24 = vsel %vm177_vm0, %v223_v16, 0.0  ;;  %v219_v6 = vld [vmem:[#allocation3] sm:$0xf] }
  0x45   : > { %v181_v25 = vrot.slane %v180_v17, 2  ;;  %v188_v26 = vrot.slane %v187_v18, 2  ;;  %v195_v27 = vrot.slane %v194_v19, 2  ;;  %v202_v28 = vrot.slane %v201_v20, 2 }
  0x46   : > { %v225_v29 = vrot.slane %v224_v21, 4  ;;  %v232_v30 = vrot.slane %v231_v22, 4  ;;  %v239_v31 = vrot.slane %v238_v23, 4  ;;  %v246_v32 = vrot.slane %v245_v24, 4 }
  0x47   : > { %v182_v33 = vadd.f32 %v181_v25, %v180_v17  ;;  %v189_v34 = vadd.f32 %v188_v26, %v187_v18  ;;  %v196_v35 = vadd.f32 %v195_v27, %v194_v19  ;;  %v203_v36 = vadd.f32 %v202_v28, %v201_v20 }
  0x48   : > { %v226_v37 = vadd.f32 %v225_v29, %v224_v21  ;;  %v233_v38 = vadd.f32 %v232_v30, %v231_v22  ;;  %v240_v39 = vadd.f32 %v239_v31, %v238_v23  ;;  %v247_v40 = vadd.f32 %v246_v32, %v245_v24 }
  0x49   : > { %v183_v41 = vrot.slane %v182_v33, 1  ;;  %v190_v42 = vrot.slane %v189_v34, 1  ;;  %v197_v43 = vrot.slane %v196_v35, 1  ;;  %v204_v44 = vrot.slane %v203_v36, 1 }
  0x4a   : > { %v227_v45 = vrot.slane %v226_v37, 2  ;;  %v234_v46 = vrot.slane %v233_v38, 2  ;;  %v241_v47 = vrot.slane %v240_v39, 2  ;;  %v248_v48 = vrot.slane %v247_v40, 2 }
  0x4b   : > { %v184_v49 = vadd.f32 %v183_v41, %v182_v33  ;;  %v191_v50 = vadd.f32 %v190_v42, %v189_v34  ;;  %v198_v51 = vadd.f32 %v197_v43, %v196_v35  ;;  %v205_v52 = vadd.f32 %v204_v44, %v203_v36 }
  0x4c   : > { %v228_v53 = vadd.f32 %v227_v45, %v226_v37  ;;  %v235_v54 = vadd.f32 %v234_v46, %v233_v38  ;;  %v242_v55 = vadd.f32 %v241_v47, %v240_v39  ;;  %v249_v56 = vadd.f32 %v248_v48, %v247_v40 }
  0x4d   : > { %v211_v58 = vsel %vm210_vm1, %v191_v50, %v184_v49  ;;  %vm268_vm4 = vcmask (%p262_p7), 1043456   ;;  %vm301_vm7 = vcmask (%p262_p7), 3072   ;;  %vm339_vm8 = vcmask (%p262_p7), 0  }
  0x4e   : > { %v213_v59 = vsel %vm212_vm2, %v198_v51, %v211_v58  ;;  %v229_v60 = vrot.slane %v228_v53, 1  ;;  %v236_v61 = vrot.slane %v235_v54, 1  ;;  %v243_v62 = vrot.slane %v242_v55, 1 }
  0x4f   : > { %v215_v63 = vsel %vm214_vm3, %v205_v52, %v213_v59  ;;  %v250_v0 = vrot.slane %v249_v56, 1 }
  0x50   : > { %v217_v1 = vadd.f32 %v215_v63, %v176_v57  ;;  %v230_v2 = vadd.f32 %v229_v60, %v228_v53  ;;  %v237_v3 = vadd.f32 %v236_v61, %v235_v54  ;;  %v244_v4 = vadd.f32 %v243_v62, %v242_v55 }
  0x51   : > { %v251_v5 = vadd.f32 %v250_v0, %v249_v56  ;;  %266 = sbr.rel (!%p262_p7) target bundleno = 484 (0x1e4), region = 36 }
  0x52   : > { %218 = vst [vmem:[#allocation2] sm:$0xf] %v217_v1  ;;  %v256_v7 = vsel %vm210_vm1, %v237_v3, %v230_v2 }
  0x53   : > { %v257_v8 = vsel %vm212_vm2, %v244_v4, %v256_v7 }
  0x54   : > { %v258_v9 = vsel %vm214_vm3, %v251_v5, %v257_v8 }
  0x55   : > { %v260_v10 = vadd.f32 %v258_v9, %v219_v6 }
  0x57   : > { %261 = vst [vmem:[#allocation3] sm:$0xf] %v260_v10 }
  0x59   : > { %v267_v11 = vld [vmem:[#allocation2] sm:$0xf] }
  0x5a   : > { %v269_v13 = vsel %vm268_vm4, %v267_v11, 0.0 }
  0x5b   : > { %270 = vadd.xlane.f32.xlu0 %v269_v13 }
  0x5e   : > { %v272_v12 = vld [vmem:[#allocation3] sm:$0xf] }
  0x5f   : > { %v273_v14 = vsel %vm268_vm4, %v272_v12, 0.0 }
  0x60   : > { %274 = vadd.xlane.f32.xlu0 %v273_v14 }
  0xe8   : > { %v271_v15 = vpop.xlane.xlu0 %270 }
  0xe9   : > { %v276_v16 = vmul.f32 0.001953125, %v271_v15 }
  0xeb   : > { %v278_v18 = vmul.f32 %v276_v16, %v276_v16  ;;  %v289_v26 = vsub.f32 2.0, %v276_v16  ;;  %v291_v27 = vadd.f32 2.0, %v276_v16 }
  0xed   : > { %v275_v17 = vpop.xlane.xlu0 %274 }
  0xee   : > { %v277_v19 = vmul.f32 0.001953125, %v275_v17 }
  0xf0   : > { %v279_v20 = vsub.f32 %v277_v19, %v278_v18 }
  0xf2   : > { %v280_v21 = vadd.f32 1e-10, %v279_v20 }
  0xf4   : > { %v281_v22 = vand.u32 2147483647, %v280_v21 }
  0xf6   : > { %530 = vrsqrt.f32 %v281_v22  ;;  %vm284_vm5 = vcmp.eq.f32.partialorder %v281_v22, inf  ;;  %v287_v25 = vand.u32 2147483648, %v281_v22  ;;  %vm286_vm6 = vcmp.eq.f32.partialorder %v281_v22, 0.0 }
 0x100   : > { %v531_v23 = vpop.eup %530 }
 0x101   : > { %v283_v24 = vmul.f32 %v531_v23, %v281_v22 }
 0x103   : > { %v285_v28 = vsel %vm284_vm5, %v281_v22, %v283_v24 }
 0x104   : > { %v288_v29 = vsel %vm286_vm6, %v287_v25, %v285_v28 }
 0x105   : > { %v297_v30 = vmul.f32 %v288_v29, %v288_v29  ;;  %v290_v31 = vsub.f32 %v289_v26, %v288_v29  ;;  %v292_v32 = vsub.f32 %v291_v27, %v288_v29  ;;  %v442_v33 = vadd.f32 -4.0, %v288_v29 }
 0x107   : > { %v298_v34 = vsub.f32 %v278_v18, %v297_v30  ;;  %v293_v35 = vmin.f32 %v290_v31, %v292_v32  ;;  %v296_v38 = vmax.f32 %v442_v33, 0.0 }
 0x109   : > { %v299_v36 = vmax.f32 %v298_v34, 0.0  ;;  %v294_v37 = vmax.f32 %v293_v35, 0.0  ;;  %v313_v42 = vmul.f32 %v296_v38, %v296_v38 }
 0x10b   : > { %v327_v39 = vsel %vm301_vm7, %v299_v36, 0.0  ;;  %v300_v40 = vmul.f32 %v294_v37, %v294_v37  ;;  %v314_v43 = vsel %vm301_vm7, %v313_v42, 0.0 }
 0x10c   : > { %328 = vadd.xlane.f32.xlu0 %v327_v39 }
 0x10d   : > { %v302_v41 = vsel %vm301_vm7, %v300_v40, 0.0 }
 0x10e   : > { %303 = vadd.xlane.f32.xlu1 %v302_v41 }
 0x112   : > { %315 = vadd.xlane.f32.xlu1 %v314_v43 }
 0x199   : > { %v329_v44 = vpop.xlane.xlu0 %328 }
 0x19a   : > { %v330_v45 = vrot.slane %v329_v44, 4 }
 0x19b   : > { %v304_v46 = vpop.xlane.xlu1 %303 }
 0x19c   : > { %v331_v47 = vadd.f32 %v330_v45, %v329_v44  ;;  %v305_v48 = vrot.slane %v304_v46, 4 }
 0x19e   : > { %v306_v49 = vadd.f32 %v305_v48, %v304_v46  ;;  %v332_v50 = vrot.slane %v331_v47, 2 }
 0x19f   : > { %v316_v51 = vpop.xlane.xlu1 %315 }
 0x1a0   : > { %v307_v52 = vrot.slane %v306_v49, 2  ;;  %v317_v53 = vrot.slane %v316_v51, 4  ;;  %v333_v56 = vadd.f32 %v332_v50, %v331_v47 }
 0x1a2   : > { %v318_v54 = vadd.f32 %v317_v53, %v316_v51  ;;  %v308_v55 = vadd.f32 %v307_v52, %v306_v49  ;;  %v334_v61 = vrot.slane %v333_v56, 1 }
 0x1a4   : > { %v319_v57 = vrot.slane %v318_v54, 2  ;;  %v309_v58 = vrot.slane %v308_v55, 1  ;;  %v335_v0 = vadd.f32 %v334_v61, %v333_v56 }
 0x1a6   : > { %v320_v59 = vadd.f32 %v319_v57, %v318_v54  ;;  %v310_v60 = vadd.f32 %v309_v58, %v308_v55 }
 0x1a8   : > { %452 = vpush %v310_v60  ;;  %v321_v62 = vrot.slane %v320_v59, 1 }
 0x1aa   : > { %v322_v63 = vadd.f32 %v321_v62, %v320_v59 }
 0x1ac   : > { %454 = vpush %v322_v63 }
 0x1ad   : > { %456 = vpush %v335_v0 }
 0x1d9   : > { %s453_s12 = spop %452 }
 0x1da   : > { %v312_v1 = vstv %s453_s12 }
 0x1dd   : > { %s455_s20 = spop %454 }
 0x1de   : > { %v324_v2 = vstv %s455_s20  ;;  %s457_s27 = spop %456 }
 0x1df   : > { %v325_v3 = vadd.f32 %v324_v2, %v312_v1  ;;  %v337_v4 = vstv %s457_s27 }
 0x1e0   : > { %v338_v5 = vmul.f32 0.25, %v337_v4 }
 0x1e1   : > { %v326_v6 = vmul.f32 0.25, %v325_v3 }
 0x1e2   : > { %341 = vst.msk [vmem:[#allocation8] sm:$0x1] %vm339_vm8, %v338_v5 }
 0x1e3   : > { %340 = vst.msk [vmem:[#allocation7] sm:$0x1] %vm339_vm8, %v326_v6 }
 0x1e4 PF: > { %p818_p9 = scmp.eq.s32.totalorder %s432_s15, 1  ;;  %s678_s30 = smov [#allocation7]  }
 0x1e5   : > { %s349_s3 = sshll.u32 %s678_s30, 4  ;;  %s679_s5 = smov [#allocation8]   ;;  %s350_s3 = int_to_ptr.vmem [resolvable:$true] %s349_s3 }
 0x1e6   : > { %s360_s6 = sshll.u32 %s679_s5, 4  ;;  %s562_s7 = scalar_lea.vmem %s350_s3, 16  ;;  %s822_s6 = int_to_ptr.vmem [resolvable:$true] %s360_s6 }
 0x1e7   : > { %p563_p5 = scmp.ne.s32.totalorder %s350_s3, %s562_s7  ;;  %s568_s8 = scalar_lea.vmem %s350_s3, 32 }
 0x1e8   : > { %p569_p10 = scmp.lt.s32.totalorder %s350_s3, %s350_s3  ;;  %p570_p12 = scmp.lt.s32.totalorder %s568_s8, %s562_s7 }
 0x1e9   : > { %p564_p6 = pnand %p563_p5, %p818_p9 }
 0x1ea   : > { %p571_p0 = por %p570_p12, %p569_p10 }
 0x1eb   : > { %p565_p8 = pneg %p564_p6 }
 0x1ed   : > { %p572_p1 = pnand %p571_p0, %p565_p8 }
 0x1ef   : > { %575 = shalt.err (!%p572_p1)
}
 0x1f0   : > { %s576_s17 = scalar_lea.hbm %s893_s1, 16 }
 0x1f1   : > { %p577_p2 = scmp.ne.s32.totalorder %s893_s1, %s576_s17  ;;  %p582_p3 = scmp.lt.u32.totalorder %s576_s17, %s893_s1 }
 0x1f3   : > { %p578_p11 = pnand %p577_p2, %p818_p9 }
 0x1f5   : > { %p579_p13 = pneg %p578_p11 }
 0x1f7   : > { %p584_p4 = pnand %p582_p3, %p579_p13 }
 0x1f9   : > { %587 = shalt.err (!%p584_p4)
}
 0x1fa   : > { %461 = dma.vmem_to_hbm [thread:$0]  (%p818_p9), %s350_s3, 16, %s893_s1, [#allocation6]  }
 0x1fb   : > { %s588_s26 = scalar_lea.vmem %s822_s6, 16  ;;  %s594_s28 = scalar_lea.vmem %s822_s6, 32 }
 0x1fc   : > { %p589_p7 = scmp.ne.s32.totalorder %s822_s6, %s588_s26  ;;  %p595_p8 = scmp.lt.s32.totalorder %s822_s6, %s822_s6 }
 0x1fd   : > { %p596_p10 = scmp.lt.s32.totalorder %s594_s28, %s588_s26 }
 0x1fe   : > { %p590_p5 = pnand %p589_p7, %p818_p9 }
 0x1ff   : > { %p597_p12 = por %p596_p10, %p595_p8 }
 0x200   : > { %p591_p6 = pneg %p590_p5 }
 0x202   : > { %p598_p0 = pnand %p597_p12, %p591_p6 }
 0x204   : > { %601 = shalt.err (!%p598_p0)
}
 0x205   : > { %s602_s20 = scalar_lea.hbm %s894_s2, 16 }
 0x206   : > { %p603_p1 = scmp.ne.s32.totalorder %s894_s2, %s602_s20  ;;  %p608_p13 = scmp.lt.u32.totalorder %s602_s20, %s894_s2 }
 0x208   : > { %p604_p2 = pnand %p603_p1, %p818_p9 }
 0x20a   : > { %p605_p11 = pneg %p604_p2 }
 0x20c   : > { %p610_p3 = pnand %p608_p13, %p605_p11 }
 0x20e   : > { %613 = shalt.err (!%p610_p3)
}
 0x20f   : > { %463 = dma.vmem_to_hbm [thread:$0]  (%p818_p9), %s822_s6, 16, %s894_s2, [#allocation9]  }
 0x210   : > { %643 = dma.done.wait (%p818_p9), [#allocation6], 16  }
 0x211   : > { %645 = vsyncadd (%p818_p9), [#allocation6], 4294967280 }
 0x212   : > { %647 = dma.done.wait (%p818_p9), [#allocation9], 16  }
 0x213   : > { %649 = vsyncadd (%p818_p9), [#allocation9], 4294967280 }
 0x214 PF: > { %s18_s14 = sadd.s32 1, %s672_s14   ;;  %s899_s9 = smov %s656_s10 }
 0x215   : > { %p15_p4 = scmp.ge.s32.totalorder %s18_s14, 4   ;;  %s900_s10 = smov %s660_s11 }
 0x216   : > { %s901_s11 = smov %s746_s21  ;;  %s902_s12 = smov %s668_s13 }
 0x217   : > { %s903_s13 = smov %s905_s16  ;;  %17 = sbr.rel (!%p15_p4) target bundleno = 6 (0x6), region = 77 }
 0x21e   :  { %377 = vsyncpa [#allocation5], 1 }
 0x21f   :  { %379 = vsyncpa [#allocation5 + $0x1], 1 }
 0x220   :  { %380 = vsyncpa [#allocation6], 1 }
 0x221   :  { %382 = vsyncpa [#allocation6 + $0x1], 1 }
 0x222   :  { %383 = vsyncpa [#allocation9], 1 }

</bundles_post_ra>
